<compile_context>
chip_gen: v7x
topology: tpu7x:2x2x1
jax: 0.10.0
libtpu: 0.0.40
codegen_flags: <defaults>
</compile_context>

<pallas_src>
import functools

import jax
import jax.numpy as jnp
from jax.experimental import pallas as pl
from jax.experimental.pallas import tpu as pltpu


def _largest_divisor_leq(n, target):
    t = min(n, max(1, int(target)))
    while n % t:
        t -= 1
    return t


# --------------------------------------------------------------------------
# Kernel A: im2col path (small Cin).  One MXU dot per tile, contraction
#           length K*K*Cin, lane-dense (>=128) output stores.
# --------------------------------------------------------------------------
def _conv_im2col_kernel(x_ref, w_ref, b_ref, o_ref):
    # x_ref : (1, TH, W, K*K*Cin)   bf16 im2col tile
    # w_ref : (K*K*Cin, tCout)      bf16 reshaped weights
    # b_ref : (1, tCout)            f32 bias
    # o_ref : (1, TH, W, tCout)
    acc = jax.lax.dot_general(
        x_ref[0], w_ref[...],
        dimension_numbers=(((2,), (0,)), ((), ())),
        preferred_element_type=jnp.float32)
    acc = acc + b_ref[0, :][None, None, :]
    o_ref[0, :, :, :] = acc.astype(o_ref.dtype)


# --------------------------------------------------------------------------
# Kernel B: per-tap path (large Cin).  K*K dots per (Cin-tile) reduction step,
#           accumulating into a VMEM f32 scratch; output written once.
# --------------------------------------------------------------------------
def _conv_taps_kernel(x_ref, w_ref, b_ref, o_ref, acc_ref, *, K, TH, W):
    # x_ref : (1, TH+K-1, W+K-1, tCin)  bf16 halo'd input tile
    # w_ref : (K, K, tCin, tCout)       bf16 weights
    # b_ref : (1, tCout)                f32 bias
    # o_ref : (1, TH, W, tCout)
    # acc_ref: (TH, W, tCout) f32 VMEM scratch (persistent across grid steps)
    ci = pl.program_id(2)

    @pl.when(ci == 0)
    def _():
        acc_ref[...] = jnp.zeros_like(acc_ref)

    for kh in range(K):            # K is small & static -> fully unrolled
        for kw in range(K):
            patch = x_ref[0, pl.ds(kh, TH), pl.ds(kw, W), :]   # (TH, W, tCin)
            w_kk = w_ref[kh, kw, :, :]                         # (tCin, tCout)
            acc_ref[...] += jax.lax.dot_general(
                patch, w_kk,
                dimension_numbers=(((2,), (0,)), ((), ())),
                preferred_element_type=jnp.float32)

    @pl.when(ci == pl.num_programs(2) - 1)
    def _():
        o_ref[0, :, :, :] = (
            acc_ref[...] + b_ref[0, :][None, None, :]).astype(o_ref.dtype)


# --------------------------------------------------------------------------
# Wrapper: same-padded conv2d + bias, matching F.conv2d(x, w, padding=K//2).
# --------------------------------------------------------------------------
def conv2d_pallas(x_nchw, w_oihw, b=None, *, tile_h=32, tile_cout=None,
                  compute_dtype=jnp.bfloat16):
    N, Cin, H, W = x_nchw.shape
    Cout, Cin_w, K, K2 = w_oihw.shape
    assert Cin == Cin_w and K == K2
    assert K % 2 == 1, "only odd kernels match PyTorch padding=K//2 semantics"
    pad = K // 2
    out_dtype = x_nchw.dtype

    if b is None:
        b = jnp.zeros((Cout,), jnp.float32)

    # ---- lane-dense Cout: pad channels-out to a multiple of 128 ----
    LANE = 128
    Cout_p = ((Cout + LANE - 1) // LANE) * LANE
    if tile_cout is None:
        tile_cout = 256 if (Cout_p % 256 == 0) else 128
    assert Cout_p % tile_cout == 0
    n_co = Cout_p // tile_cout

    # ---- H tiling ----
    TH = _largest_divisor_leq(H, tile_h)
    n_h = H // TH

    # ---- glue (plain JAX): layout + pad + dtype cast ----
    x_nhwc = jnp.transpose(x_nchw, (0, 2, 3, 1)).astype(compute_dtype)   # NHWC
    x_pad = jnp.pad(x_nhwc, ((0, 0), (pad, pad), (pad, pad), (0, 0)))
    w_hwio = jnp.transpose(w_oihw, (2, 3, 1, 0)).astype(compute_dtype)   # HWIO
    w_hwio = jnp.pad(w_hwio, ((0, 0), (0, 0), (0, 0), (0, Cout_p - Cout)))
    b_pad = jnp.pad(b.astype(jnp.float32), (0, Cout_p - Cout)).reshape(1, Cout_p)

    flops = 2 * N * H * W * K * K * Cin * Cout_p
    out_bytes = N * H * W * Cout_p * jnp.dtype(out_dtype).itemsize
    vmem_limit = 64 * 1024 * 1024

    use_im2col = (K * K * Cin) <= 256   # gate on small Cin (underfed MXU)

    if use_im2col:
        KKC = K * K * Cin
        # Wrapper-side im2col (cheap only because Cin is tiny); also absorbs
        # the spatial zero-pad, so no halo is needed in the kernel.
        cols = [x_pad[:, kh:kh + H, kw:kw + W, :]
                for kh in range(K) for kw in range(K)]
        x_im = jnp.concatenate(cols, axis=-1)                  # (N, H, W, KKC)
        x_im = x_im.reshape(N * n_h, TH, W, KKC)
        w2 = w_hwio.reshape(KKC, Cout_p)                       # matches concat order

        bytes_accessed = int(x_im.size * x_im.dtype.itemsize
                             + w2.size * w2.dtype.itemsize + out_bytes)

        out4 = pl.pallas_call(
            _conv_im2col_kernel,
            out_shape=jax.ShapeDtypeStruct((N * n_h, TH, W, Cout_p), out_dtype),
            grid=(N * n_h, n_co),
            in_specs=[
                pl.BlockSpec((1, TH, W, KKC), lambda bh, co: (bh, 0, 0, 0)),
                pl.BlockSpec((KKC, tile_cout), lambda bh, co: (0, co)),
                pl.BlockSpec((1, tile_cout), lambda bh, co: (0, co)),
            ],
            out_specs=pl.BlockSpec((1, TH, W, tile_cout),
                                   lambda bh, co: (bh, 0, 0, co)),
            compiler_params=pltpu.CompilerParams(
                dimension_semantics=("parallel", "parallel"),
                vmem_limit_bytes=vmem_limit),
            cost_estimate=pl.CostEstimate(flops=flops, transcendentals=0,
                                          bytes_accessed=bytes_accessed),
        )(x_im, w2, b_pad)
    else:
        # Cin reduction tiles (multiples of 128 when possible).
        tile_cin = 128 if Cin % 128 == 0 else Cin
        n_ci = Cin // tile_cin
        THp = TH + 2 * pad
        Wp = W + 2 * pad
        # Overlapping H tiles with halo, materialized once (keeps BlockSpecs
        # plain/Blocked).  Extra HBM is only (TH+K-1)/TH of the input.
        row_idx = (jnp.arange(n_h)[:, None] * TH
                   + jnp.arange(THp)[None, :])                 # (n_h, THp)
        x_tiles = x_pad[:, row_idx]                            # (N, n_h, THp, Wp, Cin)
        x_tiles = x_tiles.reshape(N * n_h, THp, Wp, Cin)

        bytes_accessed = int(x_tiles.size * x_tiles.dtype.itemsize * n_co
                             + w_hwio.size * w_hwio.dtype.itemsize * (N * n_h)
                             + out_bytes)

        kernel = functools.partial(_conv_taps_kernel, K=K, TH=TH, W=W)
        out4 = pl.pallas_call(
            kernel,
            out_shape=jax.ShapeDtypeStruct((N * n_h, TH, W, Cout_p), out_dtype),
            grid=(N * n_h, n_co, n_ci),
            in_specs=[
                pl.BlockSpec((1, THp, Wp, tile_cin),
                             lambda bh, co, ci: (bh, 0, 0, ci)),
                pl.BlockSpec((K, K, tile_cin, tile_cout),
                             lambda bh, co, ci: (0, 0, ci, co)),
                pl.BlockSpec((1, tile_cout), lambda bh, co, ci: (0, co)),
            ],
            out_specs=pl.BlockSpec((1, TH, W, tile_cout),
                                   lambda bh, co, ci: (bh, 0, 0, co)),
            scratch_shapes=[pltpu.VMEM((TH, W, tile_cout), jnp.float32)],
            compiler_params=pltpu.CompilerParams(
                dimension_semantics=("parallel", "parallel", "arbitrary"),
                vmem_limit_bytes=vmem_limit),
            cost_estimate=pl.CostEstimate(flops=flops, transcendentals=0,
                                          bytes_accessed=bytes_accessed),
        )(x_tiles, w_hwio, b_pad)

    out = out4.reshape(N, n_h * TH, W, Cout_p)[:, :, :, :Cout]
    return jnp.transpose(out, (0, 3, 1, 2)).astype(out_dtype)   # NCHW


# --------------------------------------------------------------------------
# Module-equivalent parameter setup (deterministic, kaiming_normal init).
# --------------------------------------------------------------------------
class Conv2dPallas:
    def __init__(self, in_channels, out_channels, kernel, key,
                 bias=True, init_weight=1.0, init_bias=0.0):
        self.in_channels = in_channels
        self.out_channels = out_channels
        self.kernel = kernel
        fan_in = in_channels * kernel * kernel
        kw_key, kb_key = jax.random.split(key)
        # kaiming_normal: sqrt(1/fan_in) * randn(shape)
        self.weight = (jnp.sqrt(1.0 / fan_in) *
                       jax.random.normal(
                           kw_key,
                           (out_channels, in_channels, kernel, kernel),
                           jnp.float32)) * init_weight
        self.bias = ((jnp.sqrt(1.0 / fan_in) *
                      jax.random.normal(kb_key, (out_channels,), jnp.float32))
                     * init_bias) if bias else None

    def __call__(self, x_nchw, **kwargs):
        return conv2d_pallas(x_nchw, self.weight, self.bias, **kwargs)


# --------------------------------------------------------------------------
# Demo / self-check
# --------------------------------------------------------------------------
if __name__ == "__main__":
    key = jax.random.PRNGKey(0)
    k1, k2, k3, k4, k5 = jax.random.split(key, 5)
    K = 3
    pad = K // 2

    # ---- Test 1: module default config (small Cin -> im2col path),
    #      Cout padded to 128 lanes, H tiled (tile_h=8 -> 2 H-tiles).
    N, Cin, H, W = 2, 4, 16, 16
    Cout = 8
    x = jax.random.normal(k1, (N, Cin, H, W), jnp.float32)
    conv = Conv2dPallas(Cin, Cout, K, k2)
    y = jax.block_until_ready(conv(x, tile_h=8))

    xr = x.astype(jnp.bfloat16).astype(jnp.float32)
    wr = conv.weight.astype(jnp.bfloat16).astype(jnp.float32)
    y_ref = jax.lax.conv_general_dilated(
        xr, wr, (1, 1), [(pad, pad), (pad, pad)],
        dimension_numbers=("NCHW", "OIHW", "NCHW"),
    ) + conv.bias.reshape(1, -1, 1, 1)
    assert y.shape == (N, Cout, H, W)
    assert jnp.allclose(y, y_ref, atol=2e-2, rtol=2e-2), \
        float(jnp.max(jnp.abs(y - y_ref)))

    # ---- Test 2: large-Cin per-tap path with Cin reduction axis (2 steps),
    #      2 Cout tiles, 2 H tiles, nonzero bias.
    N2, Cin2, H2, W2, Cout2 = 1, 256, 8, 8, 256
    x2 = jax.random.normal(k3, (N2, Cin2, H2, W2), jnp.float32)
    w2 = jax.random.normal(k4, (Cout2, Cin2, K, K), jnp.float32) * \
        (1.0 / (Cin2 * K * K)) ** 0.5
    b2 = jax.random.normal(k5, (Cout2,), jnp.float32)
    y2 = jax.block_until_ready(
        conv2d_pallas(x2, w2, b2, tile_h=4, tile_cout=128))

    x2r = x2.astype(jnp.bfloat16).astype(jnp.float32)
    w2r = w2.astype(jnp.bfloat16).astype(jnp.float32)
    y2_ref = jax.lax.conv_general_dilated(
        x2r, w2r, (1, 1), [(pad, pad), (pad, pad)],
        dimension_numbers=("NCHW", "OIHW", "NCHW"),
    ) + b2.reshape(1, -1, 1, 1)
    assert y2.shape == (N2, Cout2, H2, W2)
    assert jnp.allclose(y2, y2_ref, atol=2e-2, rtol=2e-2), \
        float(jnp.max(jnp.abs(y2 - y2_ref)))

    print("KERNEL_OK")
</pallas_src>

<mosaic_0001>
module attributes {stable_mosaic.version = 11 : i64} {
  func.func @_conv_im2col_kernel(%arg0: i32, %arg1: i32, %arg2: memref<1x8x16x36xbf16, #tpu.memory_space<vmem>>, %arg3: memref<36x128xbf16, #tpu.memory_space<vmem>>, %arg4: memref<1x128xf32, #tpu.memory_space<vmem>>, %arg5: memref<1x8x16x128xf32, #tpu.memory_space<vmem>>) attributes {dimension_semantics = [#tpu.dimension_semantics<parallel>, #tpu.dimension_semantics<parallel>], iteration_bounds = array<i64: 4, 1>, scalar_prefetch = 0 : i64, scratch_operands = 0 : i64, tpu.core_type = #tpu.core_type<tc>, window_params = [{transform_indices = @transform_0, window_bounds = array<i64: 1, 8, 16, 36>}, {transform_indices = @transform_1, window_bounds = array<i64: 36, 128>}, {transform_indices = @transform_2, window_bounds = array<i64: 1, 128>}, {transform_indices = @transform_3, window_bounds = array<i64: 1, 8, 16, 128>}]} {
    %c0 = arith.constant 0 : index
    %c0_0 = arith.constant 0 : index
    %c0_1 = arith.constant 0 : index
    %c0_2 = arith.constant 0 : index
    %0 = vector.load %arg2[%c0, %c0_0, %c0_1, %c0_2] : memref<1x8x16x36xbf16, #tpu.memory_space<vmem>>, vector<1x8x16x36xbf16>
    %1 = vector.shape_cast %0 : vector<1x8x16x36xbf16> to vector<8x16x36xbf16>
    %c0_3 = arith.constant 0 : index
    %c0_4 = arith.constant 0 : index
    %2 = vector.load %arg3[%c0_3, %c0_4] : memref<36x128xbf16, #tpu.memory_space<vmem>>, vector<36x128xbf16>
    %cst = arith.constant dense<0.000000e+00> : vector<8x16x128xf32>
    %3 = tpu.matmul %1, %2, %cst {dimension_numbers = #tpu.dot_dimension_numbers<[2], [0], [0, 1], [1], [0, 0, 0, 1, 1, 1], [], []>} : vector<8x16x36xbf16>, vector<36x128xbf16>, vector<8x16x128xf32> -> vector<8x16x128xf32>
    %c0_5 = arith.constant 0 : index
    %c0_6 = arith.constant 0 : index
    %4 = vector.load %arg4[%c0_5, %c0_6] : memref<1x128xf32, #tpu.memory_space<vmem>>, vector<1x128xf32>
    %5 = vector.shape_cast %4 : vector<1x128xf32> to vector<128xf32>
    %6 = vector.shape_cast %5 : vector<128xf32> to vector<1x1x128xf32>
    %7 = vector.broadcast %6 : vector<1x1x128xf32> to vector<8x16x128xf32>
    %8 = arith.addf %3, %7 : vector<8x16x128xf32>
    %c0_7 = arith.constant 0 : index
    %c0_8 = arith.constant 0 : index
    %c0_9 = arith.constant 0 : index
    %c0_10 = arith.constant 0 : index
    %9 = vector.load %arg5[%c0_7, %c0_8, %c0_9, %c0_10] : memref<1x8x16x128xf32, #tpu.memory_space<vmem>>, vector<1x8x16x128xf32>
    %10 = vector.shape_cast %9 : vector<1x8x16x128xf32> to vector<8x16x128xf32>
    %11 = vector.shape_cast %8 : vector<8x16x128xf32> to vector<1x8x16x128xf32>
    tpu.vector_store %arg5[%c0_7, %c0_8, %c0_9, %c0_10], %11 {strides = array<i32>} : memref<1x8x16x128xf32, #tpu.memory_space<vmem>>, vector<1x8x16x128xf32>,
    return
  }
  func.func @transform_0(%arg0: i32, %arg1: i32) -> (i32, i32, i32, i32) {
    %c0_i32 = arith.constant 0 : i32
    %c0_i32_0 = arith.constant 0 : i32
    %c0_i32_1 = arith.constant 0 : i32
    %c0_i32_2 = arith.constant 0 : i32
    return %arg0, %c0_i32, %c0_i32_0, %c0_i32_1 : i32, i32, i32, i32
  }
  func.func @transform_1(%arg0: i32, %arg1: i32) -> (i32, i32) {
    %c0_i32 = arith.constant 0 : i32
    %c0_i32_0 = arith.constant 0 : i32
    return %c0_i32, %arg1 : i32, i32
  }
  func.func @transform_2(%arg0: i32, %arg1: i32) -> (i32, i32) {
    %c0_i32 = arith.constant 0 : i32
    %c0_i32_0 = arith.constant 0 : i32
    return %c0_i32, %arg1 : i32, i32
  }
  func.func @transform_3(%arg0: i32, %arg1: i32) -> (i32, i32, i32, i32) {
    %c0_i32 = arith.constant 0 : i32
    %c0_i32_0 = arith.constant 0 : i32
    %c0_i32_1 = arith.constant 0 : i32
    return %arg0, %c0_i32, %c0_i32_0, %arg1 : i32, i32, i32, i32
  }
}

</mosaic_0001>

<bundles_post_ra>
// kernel: tpu_custom_call.1
= control target key start
LH: loop header
LB: loop body
LE: loop exit
PB: predicated region body
PF: predicated region fallthrough
CT: control target
= control target key end

     0   :  { %8 = vsyncpa [#allocation3], 0  ;;  %s1264_s0 = inlined_call_operand.hbm [shape: bf16[4,8,16,36], index: 0, kind: input, shape index: {}]   ;;  %s1265_s1 = inlined_call_operand.hbm [shape: bf16[36,128], index: 1, kind: input, shape index: {}]   ;;  %s1266_s2 = inlined_call_operand.hbm [shape: f32[1,128], index: 2, kind: input, shape index: {}]   ;;  %s1267_s3 = inlined_call_operand.hbm [shape: f32[4,8,16,128], index: 3, kind: output, shape index: {}]  }
   0x1   :  { %10 = vsyncpa [#allocation3 + $0x1], 0 }
   0x2   :  { %11 = vsyncpa [#allocation6], 0 }
   0x3   :  { %12 = vsyncpa [#allocation4], 0 }
   0x4   :  { %14 = vsyncpa [#allocation4 + $0x1], 0  ;;  %s973_s12 = smov 0   ;;  %s975_s13 = smov 0  }
   0x5   :  { %s977_s14 = smov 0   ;;  %s979_s15 = smov 0  }
   0x6   :  { %s981_s16 = smov 0   ;;  %s983_s17 = smov 0  }
   0x7 LB: > { %s591_s18 = sadd.s32 4294967295, %s943_s17   ;;  %s592_s19 = sadd.s32 4294967294, %s943_s17   ;;  %s943_s17 = sphi %s983_s17, %s20_s17   ;;  %s939_s16 = sphi %s981_s16, %s1289_s16   ;;  %s935_s15 = sphi %s979_s15, %s1288_s15   ;;  %s931_s14 = sphi %s977_s14, %s1287_s14   ;;  %s927_s13 = sphi %s975_s13, %s1286_s13   ;;  %s923_s12 = sphi %s973_s12, %s1285_s12  }
   0x8   : > { %p52_p0 = scmp.ne.s32.totalorder %s927_s13, %s923_s12  ;;  %p1007_p1 = scmp.eq.s32.totalorder %s591_s18, 0 }
   0x9   : > { %p1011_p2 = scmp.eq.s32.totalorder %s591_s18, 3  ;;  %p136_p3 = scmp.eq.s32.totalorder %s592_s19, 3 }
   0xa   : > { %s1272_s20 = scalar_select %p1007_p1, 1, 0 }
   0xb   : > { %s1273_s21 = scalar_select %p1011_p2, 1, 0 }
   0xc   : > { %p1017_p4 = por %p1007_p1, %p52_p0  ;;  %p593_p5 = scmp.ge.s32.totalorder %s943_s17, 1 }
   0xd   : > { %p1022_p6 = por %p136_p3, %p52_p0  ;;  %p143_p7 = scmp.lt.s32.totalorder %s943_s17, 5 }
   0xe   : > { %s1274_s22 = scalar_select %p1017_p4, 1, 0 }
   0xf   : > { %s1275_s23 = scalar_select %p1022_p6, 1, 0 }
  0x10   : > { %p1027_p8 = pnand %p593_p5, %p143_p7  ;;  %s945_s25 = smov [#allocation5]  }
  0x11   : > { %s157_s26 = sshll.u32 %s945_s25, 4  ;;  %s946_s28 = smov [#allocation7]   ;;  %s158_s26 = int_to_ptr.vmem [resolvable:$true] %s157_s26 }
  0x12   : > { %s1276_s24 = scalar_select %p1027_p8, 1, 0 }
  0x13   : > { %p685_p9 = pneg %p1027_p8  ;;  %s173_s29 = sshll.u32 %s946_s28, 4  ;;  %s1039_s29 = int_to_ptr.vmem [resolvable:$true] %s173_s29 }
  0x14   : > { %s771_s5 = scalar_lea.hbm %s1265_s1, 320 }
  0x15   : > { %p1035_p10 = pnand %p685_p9, %p1007_p1  ;;  %p772_p11 = scmp.ne.s32.totalorder %s1265_s1, %s771_s5 }
  0x16   : > { %p778_p3 = scmp.lt.u32.totalorder %s771_s5, %s1265_s1 }
  0x17   : > { %p773_p12 = pneg %p1035_p10 }
  0x19   : > { %p774_p13 = pnand %p773_p12, %p772_p11 }
  0x1b   : > { %p775_p0 = pneg %p774_p13 }
  0x1d   : > { %p780_p5 = pnand %p778_p3, %p775_p0 }
  0x1f   : > { %783 = shalt.err (!%p780_p5)
}
  0x20   : > { %s784_s10 = scalar_lea.vmem %s158_s26, 320  ;;  %p792_p1 = scmp.lt.s32.totalorder %s158_s26, %s158_s26 }
  0x21   : > { %p785_p7 = scmp.ne.s32.totalorder %s158_s26, %s784_s10  ;;  %p793_p4 = scmp.lt.s32.totalorder %s784_s10, %s784_s10 }
  0x23   : > { %p787_p9 = pnand %p785_p7, %p773_p12  ;;  %p794_p8 = por %p793_p4, %p792_p1 }
  0x25   : > { %p788_p6 = pneg %p787_p9 }
  0x27   : > { %p795_p2 = pnand %p794_p8, %p788_p6 }
  0x29   : > { %798 = shalt.err (!%p795_p2)
}
  0x2a   : > { %s947_s11 = smov 64   ;;  %s948_s18 = smov 4  }
  0x2b   : > { %688 = dma.hbm_to_vmem [thread:$0]  (!%p1035_p10), %s1265_s1, 320, %s158_s26, [#allocation6], %s947_s11, %s947_s11, %s948_s18  }
  0x2c   : > { %s799_s4 = scalar_lea.hbm %s1266_s2, 16 }
  0x2d   : > { %p800_p1 = scmp.ne.s32.totalorder %s1266_s2, %s799_s4  ;;  %p806_p6 = scmp.lt.u32.totalorder %s799_s4, %s1266_s2 }
  0x2f   : > { %p802_p2 = pnand %p800_p1, %p773_p12 }
  0x31   : > { %p803_p4 = pneg %p802_p2 }
  0x33   : > { %p808_p8 = pnand %p806_p6, %p803_p4 }
  0x35   : > { %811 = shalt.err (!%p808_p8)
}
  0x36   : > { %s812_s26 = scalar_lea.vmem %s1039_s29, 16  ;;  %s819_s9 = scalar_lea.vmem %s1039_s29, 32 }
  0x37   : > { %p813_p11 = scmp.ne.s32.totalorder %s1039_s29, %s812_s26  ;;  %p820_p3 = scmp.lt.s32.totalorder %s1039_s29, %s1039_s29 }
  0x38   : > { %p821_p5 = scmp.lt.s32.totalorder %s819_s9, %s812_s26 }
  0x39   : > { %p815_p13 = pnand %p813_p11, %p773_p12 }
  0x3a   : > { %p822_p7 = por %p821_p5, %p820_p3 }
  0x3b   : > { %p816_p0 = pneg %p815_p13 }
  0x3d   : > { %p823_p9 = pnand %p822_p7, %p816_p0 }
  0x3f   : > { %826 = shalt.err (!%p823_p9)
}
  0x40   : > { %691 = dma.hbm_to_vmem [thread:$0]  (!%p1035_p10), %s1266_s2, 16, %s1039_s29, [#allocation6]  }
  0x41   : > { %s32_s25 = sadd.s32 1, %s939_s16  ;;  %s39_s28 = sadd.s32 1, %s931_s14 }
  0x42   : > { %p34_p12 = scmp.ge.s32.totalorder %s32_s25, 4  ;;  %p46_p1 = scmp.ne.s32.totalorder %s931_s14, %s927_s13 }
  0x43   : > { %p47_p2 = scmp.eq.s32.totalorder %s943_s17, 0  ;;  %p702_p4 = scmp.lt.s32.totalorder %s943_s17, 4 }
  0x44   : > { %s1291_s25 = smov (%p34_p12, %s32_s25), 0  ;;  %p1278_p8 = scmp.ne.s32.totalorder %s1273_s21, 0 }
  0x45   : > { %p48_p6 = por %p47_p2, %p46_p1  ;;  %s36_s30 = ssub.s32 %s939_s16, %s1291_s25 }
  0x46   : > { %p1102_p11 = por %p1278_p8, %p46_p1  ;;  %s184_s4 = sand.u32 1, %s931_s14  }
  0x47   : > { %p37_p13 = scmp.eq.s32.totalorder %s36_s30, 0  ;;  %s597_s29 = sshll.u32 %s184_s4, 6 }
  0x48   : > { %s630_s5 = sshll.u32 %s939_s16, 10  ;;  %s188_s21 = scalar_lea.vmem [#allocation2], %s597_s29 }
  0x49   : > { %s1111_s6 = scalar_select %p37_p13, %s931_s14, %s39_s28  }
  0x4a   : > { %s1116_s26 = scalar_lea.hbm %s1264_s0, %s630_s5  ;;  %s195_s9 = sshll.u32 %s188_s21, 4  ;;  %s1124_s9 = int_to_ptr.vmem [resolvable:$true] %s195_s9 }
  0x4b   : > { %p1120_p10 = pnand %p702_p4, %p48_p6  ;;  %s1126_s19 = scalar_lea.sflag [#allocation3], %s184_s4 }
  0x4c   : > { %s827_s28 = scalar_lea.hbm %s1116_s26, 1024  ;;  %s832_s5 = scalar_lea.hbm %s1264_s0, 4096 }
  0x4d   : > { %p828_p0 = scmp.ne.s32.totalorder %s1116_s26, %s827_s28  ;;  %p829_p3 = pneg %p1120_p10 }
  0x4e   : > { %p833_p9 = scmp.lt.u32.totalorder %s1116_s26, %s1264_s0  ;;  %p834_p12 = scmp.lt.u32.totalorder %s832_s5, %s827_s28 }
  0x4f   : > { %p830_p5 = pnand %p829_p3, %p828_p0  ;;  %p836_p2 = scmp.lt.u32.totalorder %s827_s28, %s1116_s26 }
  0x50   : > { %p835_p1 = por %p834_p12, %p833_p9 }
  0x51   : > { %p831_p7 = pneg %p830_p5 }
  0x52   : > { %p837_p4 = por %p836_p2, %p835_p1 }
  0x54   : > { %p838_p6 = pnand %p837_p4, %p831_p7 }
  0x56   : > { %841 = shalt.err (!%p838_p6)
}
  0x57   : > { %s842_s4 = scalar_lea.vmem %s1124_s9, 1024  ;;  %s949_s21 = smov [#allocation2]  }
  0x58   : > { %p843_p8 = scmp.ne.s32.totalorder %s1124_s9, %s842_s4  ;;  %s847_s30 = sshll.u32 %s949_s21, 4  ;;  %s848_s30 = int_to_ptr.vmem [resolvable:$false] %s847_s30 }
  0x59   : > { %s849_s29 = scalar_lea.vmem %s848_s30, 2048  ;;  %p850_p5 = scmp.lt.s32.totalorder %s1124_s9, %s848_s30 }
  0x5a   : > { %p845_p13 = pnand %p843_p8, %p829_p3  ;;  %p851_p9 = scmp.lt.s32.totalorder %s849_s29, %s842_s4 }
  0x5c   : > { %p846_p0 = pneg %p845_p13  ;;  %p852_p12 = por %p851_p9, %p850_p5 }
  0x5e   : > { %p853_p1 = pnand %p852_p12, %p846_p0 }
  0x60   : > { %856 = shalt.err (!%p853_p1)
}
  0x61   : > { %695 = dma.hbm_to_vmem [thread:$0]  (!%p1120_p10), %s1116_s26, 1024, %s1124_s9, %s1126_s19, %s947_s11, %s947_s11, %s948_s18  }
  0x62   : > { %p1281_p3 = scmp.ne.s32.totalorder %s1276_s24, 0 }
  0x63   : > { %s1160_s28 = sand.u32 (!%p1281_p3), 1, %s927_s13   ;;  %p1282_p7 = scmp.ne.s32.totalorder (!%p1281_p3), %s1274_s22, 0 }
  0x64   : > { %207 = sbr.rel (%p1281_p3) target bundleno = 364 (0x16c), region = 32  ;;  %s601_s5 = sshll.u32 (!%p1281_p3), %s1160_s28, 6 }
  0x65   : > { %s210_s7 = scalar_lea.sflag (!%p1281_p3), [#allocation3], %s1160_s28  ;;  %s1164_s8 = scalar_lea.vmem (!%p1281_p3), [#allocation2], %s601_s5 }
  0x6b   : > { %910 = dma.done.wait (%p1282_p7), %s210_s7, 1024  }
  0x6c   : > { %912 = vsyncadd (%p1282_p7), %s210_s7, 4294966272  ;;  %p1283_p10 = scmp.ne.s32.totalorder %s1272_s20, 0 }
  0x6e   : > { %914 = dma.done.wait (%p1283_p10), [#allocation6], 336  }
  0x6f   : > { %916 = vsyncadd (%p1283_p10), [#allocation6], 4294966960  ;;  %v760_v0 = vld [vmem:[#allocation5] sm:$0xff]   ;;  %v761_v1 = vld [vmem:[#allocation5 + $0x8] sm:$0xff]   ;;  %vm328_vm0 = vcmask 293888   ;;  %vm353_vm1 = vcmask 1041408  }
  0x70   : > { %643 = vmatprep.subr.bf16.mxu0 %v760_v0  ;;  %665 = vmatprep.subr.bf16.mxu1 %v760_v0  ;;  %v762_v2 = vld [vmem:[#allocation5 + $0x10] ss:$0 sps:$4 sm:$0x33]   ;;  %v763_v3 = vld [vmem:[%s1164_s8] sm:$0xff]   ;;  %v765_v6 = vld [vmem:[%s1164_s8 + $0x8] sm:$0xff]   ;;  %s604_s20 = sshll.u32 %s1160_s28, 7 }
  0x71   : > { %644 = vmatpush3.bf16.msra.mxu0 %v760_v0  ;;  %668 = vmatpush3.bf16.msra.mxu1 %v760_v0  ;;  %v764_v4 = vld [vmem:[%s1164_s8 + $0x20] sm:$0xff]   ;;  %v355_v5 = vsel %vm353_vm1, %v762_v2, 0  ;;  %v766_v7 = vld [vmem:[%s1164_s8 + $0x28] sm:$0xff]   ;;  %v767_v8 = vld [vmem:[%s1164_s8 + $0x10] sm:$0xff]   ;;  %s1191_s22 = scalar_lea.vmem [#allocation8], %s604_s20  ;;  %s631_s24 = sshll.u32 %s935_s15, 11 }
  0x72   : > { %645 = vmatprep.subr.bf16.mxu0 %v761_v1  ;;  %666 = vmatprep.subr.bf16.mxu1 %v761_v1  ;;  %v768_v9 = vld [vmem:[%s1164_s8 + $0x30] sm:$0xff]   ;;  %v769_v10 = vld [vmem:[%s1164_s8 + $0x18] sm:$0xff]   ;;  %s485_s11 = sshll.u32 %s1191_s22, 4  ;;  %s1208_s26 = scalar_lea.hbm %s1267_s3, %s631_s24  ;;  %s1210_s11 = int_to_ptr.vmem [resolvable:$true] %s485_s11 }
  0x73   : > { %649 = vmatprep.mubr.msk.bf16.mxu0 %vm328_vm0, %v763_v3  ;;  %657 = vmatprep.mubr.msk.bf16.mxu1 %vm328_vm0, %v764_v4  ;;  %v770_v11 = vld [vmem:[%s1164_s8 + $0x38] sm:$0xff]   ;;  %v605_v12 = vld [vmem:[#allocation7] ss:$0 sm:$0xff]  ;;  %s471_s9 = scalar_lea.sflag [#allocation4], %s1160_s28  ;;  %s857_s10 = scalar_lea.vmem %s1210_s11, 2048 }
  0x74   : > { %p858_p2 = scmp.ne.s32.totalorder %s1210_s11, %s857_s10  ;;  %s950_s19 = smov [#allocation8]  }
  0x75   : > { %646 = vmatpush3.bf16.msra.mxu0 %v761_v1  ;;  %669 = vmatpush3.bf16.msra.mxu1 %v761_v1  ;;  %s861_s4 = sshll.u32 %s950_s19, 4  ;;  %s862_s4 = int_to_ptr.vmem [resolvable:$false] %s861_s4 }
  0x76   : > { %671 = vmatprep.subr.msk.bf16.mxu0 %vm353_vm1, %v762_v2  ;;  %672 = vmatprep.subr.msk.bf16.mxu1 %vm353_vm1, %v762_v2  ;;  %p859_p4 = pnand %p858_p2, %p1102_p11  ;;  %s863_s21 = scalar_lea.vmem %s862_s4, 4096 }
  0x77   : > { %p864_p8 = scmp.lt.s32.totalorder %s1210_s11, %s862_s4  ;;  %p865_p13 = scmp.lt.s32.totalorder %s863_s21, %s857_s10 }
  0x78   : > { %p860_p6 = pneg %p859_p4 }
  0x79   : > { %648 = vmatpush3.bf16.msra.mxu0 %v355_v5  ;;  %670 = vmatpush3.bf16.msra.mxu1 %v355_v5  ;;  %p866_p0 = por %p865_p13, %p864_p8 }
  0x7b   : > { %p867_p5 = pnand %p866_p0, %p860_p6 }
  0x7c   : > { %650 = vmatmul.mubr.msk.bf16.vlgmr.msra.gmra.mrb[0].mxu0 %vm328_vm0, %v765_v6  ;;  %658 = vmatmul.mubr.msk.bf16.vlgmr.msra.gmra.mrb[0].mxu1 %vm328_vm0, %v766_v7 }
  0x7d   : > { %653 = vmatprep.mubr.msk.bf16.mxu0 %vm328_vm0, %v767_v8  ;;  %661 = vmatprep.mubr.msk.bf16.mxu1 %vm328_vm0, %v768_v9 }
  0x84   : > { %654 = vmatmul.mubr.msk.bf16.gmra.mrb[4].mxu0 %vm328_vm0, %v769_v10  ;;  %662 = vmatmul.mubr.msk.bf16.gmra.mrb[4].mxu1 %vm328_vm0, %v770_v11 }
 0x14f   : > { %v651_v13 = vpop.f32.mrb[0].mxu0  ;;  %v659_v14 = vpop.f32.mrb[0].mxu1 }
 0x150   : > { %v400_v15 = vadd.f32 %v651_v13, %v605_v12  ;;  %v432_v16 = vadd.f32 %v659_v14, %v605_v12  ;;  %v391_v17 = vpop.f32.mrb[1].mxu0  ;;  %v423_v18 = vpop.f32.mrb[1].mxu1 }
 0x151   : > { %v392_v19 = vadd.f32 %v605_v12, %v391_v17  ;;  %v424_v20 = vadd.f32 %v605_v12, %v423_v18  ;;  %v652_v21 = vpop.f32.mrb[2].mxu0  ;;  %v660_v22 = vpop.f32.mrb[2].mxu1 }
 0x152   : > { %456 = vst [vmem:[%s1191_s22 + $0x10] sm:$0xff] %v400_v15  ;;  %464 = vst [vmem:[%s1191_s22 + $0x50] sm:$0xff] %v432_v16  ;;  %v403_v23 = vadd.f32 %v652_v21, %v605_v12  ;;  %v435_v24 = vadd.f32 %v660_v22, %v605_v12  ;;  %v394_v25 = vpop.f32.mrb[3].mxu0  ;;  %v426_v26 = vpop.f32.mrb[3].mxu1 }
 0x153   : > { %454 = vst [vmem:[%s1191_s22] sm:$0xff] %v392_v19  ;;  %462 = vst [vmem:[%s1191_s22 + $0x40] sm:$0xff] %v424_v20  ;;  %v395_v27 = vadd.f32 %v605_v12, %v394_v25  ;;  %v427_v28 = vadd.f32 %v605_v12, %v426_v26 }
 0x154   : > { %457 = vst [vmem:[%s1191_s22 + $0x18] sm:$0xff] %v403_v23  ;;  %465 = vst [vmem:[%s1191_s22 + $0x58] sm:$0xff] %v435_v24 }
 0x155   : > { %455 = vst [vmem:[%s1191_s22 + $0x8] sm:$0xff] %v395_v27  ;;  %463 = vst [vmem:[%s1191_s22 + $0x48] sm:$0xff] %v427_v28 }
 0x157   : > { %v655_v29 = vpop.f32.mrb[4].mxu0  ;;  %v663_v30 = vpop.f32.mrb[4].mxu1 }
 0x158   : > { %v416_v31 = vadd.f32 %v655_v29, %v605_v12  ;;  %v448_v32 = vadd.f32 %v663_v30, %v605_v12  ;;  %v407_v33 = vpop.f32.mrb[5].mxu0  ;;  %v439_v34 = vpop.f32.mrb[5].mxu1 }
 0x159   : > { %v408_v35 = vadd.f32 %v605_v12, %v407_v33  ;;  %v440_v36 = vadd.f32 %v605_v12, %v439_v34  ;;  %v656_v37 = vpop.f32.mrb[6].mxu0  ;;  %v664_v38 = vpop.f32.mrb[6].mxu1 }
 0x15a   : > { %460 = vst [vmem:[%s1191_s22 + $0x30] sm:$0xff] %v416_v31  ;;  %468 = vst [vmem:[%s1191_s22 + $0x70] sm:$0xff] %v448_v32  ;;  %v419_v39 = vadd.f32 %v656_v37, %v605_v12  ;;  %v451_v40 = vadd.f32 %v664_v38, %v605_v12  ;;  %v410_v41 = vpop.f32.mrb[7].mxu0  ;;  %v442_v42 = vpop.f32.mrb[7].mxu1 }
 0x15b   : > { %458 = vst [vmem:[%s1191_s22 + $0x20] sm:$0xff] %v408_v35  ;;  %466 = vst [vmem:[%s1191_s22 + $0x60] sm:$0xff] %v440_v36  ;;  %v411_v43 = vadd.f32 %v605_v12, %v410_v41  ;;  %v443_v44 = vadd.f32 %v605_v12, %v442_v42 }
 0x15c   : > { %461 = vst [vmem:[%s1191_s22 + $0x38] sm:$0xff] %v419_v39  ;;  %469 = vst [vmem:[%s1191_s22 + $0x78] sm:$0xff] %v451_v40 }
 0x15d   : > { %459 = vst [vmem:[%s1191_s22 + $0x28] sm:$0xff] %v411_v43  ;;  %467 = vst [vmem:[%s1191_s22 + $0x68] sm:$0xff] %v443_v44 }
 0x15e   : > { %870 = shalt.err (!%p867_p5)
}
 0x15f   : > { %s871_s30 = scalar_lea.hbm %s1208_s26, 2048  ;;  %s875_s7 = scalar_lea.hbm %s1267_s3, 8192 }
 0x160   : > { %p872_p9 = scmp.ne.s32.totalorder %s1208_s26, %s871_s30  ;;  %p876_p3 = scmp.lt.u32.totalorder %s1208_s26, %s1267_s3 }
 0x161   : > { %p877_p7 = scmp.lt.u32.totalorder %s875_s7, %s871_s30  ;;  %p879_p2 = scmp.lt.u32.totalorder %s871_s30, %s1208_s26 }
 0x162   : > { %p873_p12 = pnand %p872_p9, %p1102_p11 }
 0x163   : > { %p878_p10 = por %p877_p7, %p876_p3 }
 0x164   : > { %p874_p1 = pneg %p873_p12 }
 0x165   : > { %p880_p4 = por %p879_p2, %p878_p10 }
 0x167   : > { %p881_p6 = pnand %p880_p4, %p874_p1 }
 0x169   : > { %884 = shalt.err (!%p881_p6)
}
 0x16a   : > { %s951_s22 = smov 128   ;;  %s952_s24 = smov 8  }
 0x16b   : > { %683 = dma.vmem_to_hbm [thread:$0]  (%p1102_p11), %s1210_s11, 2048, %s1208_s26, %s471_s9, %s951_s22, %s951_s22, %s952_s24  }
 0x16c PF: > { %p705_p8 = scmp.ge.s32.totalorder %s943_s17, 2  ;;  %s500_s15 = sand.u32 1, %s923_s12  }
 0x16d   : > { %p1284_p13 = scmp.ne.s32.totalorder %s1275_s23, 0  ;;  %s501_s18 = scalar_lea.sflag [#allocation4], %s500_s15 }
 0x16f   : > { %p697_p0 = pnand %p705_p8, %p1284_p13 }
 0x171   : > { %918 = dma.done.wait (!%p697_p0), %s501_s18, 2048  }
 0x172   : > { %920 = vsyncadd (!%p697_p0), %s501_s18, 4294965248  ;;  %s20_s17 = sadd.s32 1, %s943_s17   ;;  %s1285_s12 = smov %s927_s13 }
 0x173   : > { %p17_p5 = scmp.ge.s32.totalorder %s20_s17, 6   ;;  %s1286_s13 = smov %s931_s14 }
 0x174   : > { %s1287_s14 = smov %s1111_s6  ;;  %s1288_s15 = smov %s939_s16 }
 0x175   : > { %s1289_s16 = smov %s1291_s25  ;;  %19 = sbr.rel (!%p17_p5) target bundleno = 7 (0x7), region = 87 }
 0x17c   :  { %506 = vsyncpa [#allocation3], 1 }
 0x17d   :  { %508 = vsyncpa [#allocation3 + $0x1], 1 }
 0x17e   :  { %509 = vsyncpa [#allocation6], 1 }
 0x17f   :  { %510 = vsyncpa [#allocation4], 1 }
 0x180   :  { %512 = vsyncpa [#allocation4 + $0x1], 1 }

</bundles_post_ra>
